<compile_context>
chip_gen: v5e
topology: v5e:2x2
jax: 0.10.0
libtpu: 0.0.40
codegen_flags: <defaults>
</compile_context>

<pallas_src>
import jax
import jax.numpy as jnp
from jax.experimental import pallas as pl
from jax.experimental.pallas import tpu as pltpu


def _round_up(a, b):
    return ((a + b - 1) // b) * b


def _cdiv(a, b):
    return (a + b - 1) // b


# -----------------------------------------------------------------------------
# Kernels
# -----------------------------------------------------------------------------

def _mlp_kernel_single_k(x_ref, w1_ref, b1_ref, w2_ref, b2_ref, o_ref):
    """Whole In dim in one tile (K grid collapsed to 1).

    No VMEM accumulator / pl.when: the fc1 reduction happens entirely in the
    MXU result path, removing TB*Hp*8 bytes of acc load+store per K step
    (biggest relief on v5e's single vst slot; free on v7x's MRB accumulate).
    """
    h = jnp.maximum(
        jnp.dot(x_ref[...], w1_ref[...], preferred_element_type=jnp.float32)
        + b1_ref[...], 0.0)
    out = jnp.dot(h.astype(w2_ref.dtype), w2_ref[...],
                  preferred_element_type=jnp.float32) + b2_ref[...]
    o_ref[...] = out.astype(o_ref.dtype)


def _mlp_kernel_k_reduce(x_ref, w1_ref, b1_ref, w2_ref, b2_ref, o_ref, acc_ref):
    """K-reduction over In (last grid axis, 'arbitrary') with f32 accumulator."""
    k = pl.program_id(1)

    @pl.when(k == 0)
    def _():
        acc_ref[...] = jnp.zeros_like(acc_ref)

    acc_ref[...] += jnp.dot(x_ref[...], w1_ref[...],
                            preferred_element_type=jnp.float32)

    @pl.when(k == pl.num_programs(1) - 1)
    def _():
        # bias + ReLU + fc2 only once, in the finalize branch.
        h = jnp.maximum(acc_ref[...] + b1_ref[...], 0.0)
        out = jnp.dot(h.astype(w2_ref.dtype), w2_ref[...],
                      preferred_element_type=jnp.float32) + b2_ref[...]
        o_ref[...] = out.astype(o_ref.dtype)


# -----------------------------------------------------------------------------
# Parameter preparation (done ONCE, outside the per-call path)
# -----------------------------------------------------------------------------

def prepare_params(w1, b1, w2, b2, *, weight_dtype=jnp.bfloat16):
    """Pad weights to lane-aligned shapes and cast to the MXU dtype once.

    w1: (In, H) pre-transposed Linear weight; b1: (H,); w2: (H, Out); b2: (Out,).
    Zero padding is exact for this MLP (zero rows/cols contribute nothing,
    padded biases are zero, ReLU(0) == 0).
    """
    In, H = w1.shape
    H2, Out = w2.shape
    assert H2 == H
    Inp = _round_up(In, 128)
    Hp = _round_up(H, 128)
    Op = _round_up(Out, 128)

    f32 = jnp.float32
    w1_p = jnp.zeros((Inp, Hp), weight_dtype).at[:In, :H].set(w1.astype(weight_dtype))
    b1_p = jnp.zeros((1, Hp), f32).at[0, :H].set(b1.astype(f32))
    w2_p = jnp.zeros((Hp, Op), weight_dtype).at[:H, :Out].set(w2.astype(weight_dtype))
    b2_p = jnp.zeros((1, Op), f32).at[0, :Out].set(b2.astype(f32))
    return {"w1": w1_p, "b1": b1_p, "w2": w2_p, "b2": b2_p,
            "in_size": In, "hidden_size": H, "out_size": Out}


# -----------------------------------------------------------------------------
# Per-chip VMEM budgeting and tile selection
# -----------------------------------------------------------------------------

def _vmem_budget_bytes():
    """~75% of physical VMEM: ~48 MiB on v7x (64 MiB), ~96 MiB on v5e/v6e (128 MiB)."""
    try:
        cap = int(pltpu.get_tpu_info().vmem_capacity_bytes)
    except Exception:
        cap = 64 * 1024 * 1024  # conservative (v7x) fallback
    return int(cap * 3 // 4)


def _select_tiles(B, Inp, Hp, Op, xbytes, wbytes, obytes, budget):
    """Pick (TB, TK) with an explicit VMEM tally against `budget`."""
    TB = min(512, _round_up(B, 16))
    if B >= 256:
        # >= 2 batch tiles so v7x's second TensorCore gets work
        # (neutral on single-TC v5e/v6e).
        TB = min(TB, _round_up(_cdiv(B, 2), 16))

    # Grid-invariant, single-buffered operands: b1, w2, b2.
    const_bytes = Hp * 4 + Hp * Op * wbytes + Op * 4

    def fits_single_k(tb):
        return (2 * tb * Inp * xbytes          # x tile, double-buffered
                + Inp * Hp * wbytes            # w1 fully resident, Buffered(1)
                + const_bytes
                + 2 * tb * Op * obytes) <= budget

    def fits_multi_k(tb, tk):
        return (tb * Hp * 4                    # f32 accumulator scratch
                + 2 * tb * tk * xbytes         # x K-tiles, double-buffered
                + 2 * tk * Hp * wbytes         # w1 K-slices, double-buffered
                + const_bytes
                + 2 * tb * Op * obytes) <= budget

    while True:
        if fits_single_k(TB):
            return TB, Inp                     # K grid collapses to 1
        for tk in (1024, 512, 256, 128):
            if tk < Inp and Inp % tk == 0 and fits_multi_k(TB, tk):
                return TB, tk
        if TB <= 128:
            # TODO(synk): tile Hp/Op as extra grid axes for very large models.
            return TB, (128 if Inp % 128 == 0 else Inp)
        TB = max(128, _round_up(TB // 2, 16))


# -----------------------------------------------------------------------------
# Forward
# -----------------------------------------------------------------------------

def simple_mlp_forward(x, params, *, out_dtype=None):
    """x: (B, In) float; params: output of prepare_params()."""
    B, In = x.shape
    assert In == params["in_size"]
    w1_p, b1_p, w2_p, b2_p = params["w1"], params["b1"], params["w2"], params["b2"]
    Inp, Hp = w1_p.shape
    Op = w2_p.shape[1]
    Out = params["out_size"]

    out_dtype = x.dtype if out_dtype is None else out_dtype
    xbytes = 2                                   # bf16 activations into the MXU
    wbytes = jnp.dtype(w1_p.dtype).itemsize
    obytes = jnp.dtype(out_dtype).itemsize

    budget = _vmem_budget_bytes()
    TB, TK = _select_tiles(B, Inp, Hp, Op, xbytes, wbytes, obytes, budget)

    # Only x is padded / cast per call (weights were prepared once).
    Bp = _round_up(B, TB)
    x_p = jnp.zeros((Bp, Inp), jnp.bfloat16).at[:B, :In].set(x.astype(jnp.bfloat16))

    single_buf = dict(pipeline_mode=pl.Buffered(1))   # grid-invariant operands

    if TK == Inp:
        # Single-K path: no accumulator scratch, w1 fully resident.
        grid = (Bp // TB,)
        kernel = _mlp_kernel_single_k
        in_specs = [
            pl.BlockSpec((TB, Inp), lambda i: (i, 0)),
            pl.BlockSpec((Inp, Hp), lambda i: (0, 0), **single_buf),
            pl.BlockSpec((1, Hp), lambda i: (0, 0), **single_buf),
            pl.BlockSpec((Hp, Op), lambda i: (0, 0), **single_buf),
            pl.BlockSpec((1, Op), lambda i: (0, 0), **single_buf),
        ]
        out_specs = pl.BlockSpec((TB, Op), lambda i: (i, 0))
        scratch = []
        dims = ("parallel",)
    else:
        # K-reduction path for large In: K last and 'arbitrary'.
        grid = (Bp // TB, Inp // TK)
        kernel = _mlp_kernel_k_reduce
        in_specs = [
            pl.BlockSpec((TB, TK), lambda i, k: (i, k)),
            pl.BlockSpec((TK, Hp), lambda i, k: (k, 0)),
            pl.BlockSpec((1, Hp), lambda i, k: (0, 0), **single_buf),
            pl.BlockSpec((Hp, Op), lambda i, k: (0, 0), **single_buf),
            pl.BlockSpec((1, Op), lambda i, k: (0, 0), **single_buf),
        ]
        out_specs = pl.BlockSpec((TB, Op), lambda i, k: (i, 0))
        scratch = [pltpu.VMEM((TB, Hp), jnp.float32)]
        dims = ("parallel", "arbitrary")

    out_p = pl.pallas_call(
        kernel,
        out_shape=jax.ShapeDtypeStruct((Bp, Op), out_dtype),
        grid_spec=pltpu.PrefetchScalarGridSpec(
            num_scalar_prefetch=0,
            grid=grid,
            in_specs=in_specs,
            out_specs=out_specs,
            scratch_shapes=scratch,
        ),
        compiler_params=pltpu.CompilerParams(
            dimension_semantics=dims,
            vmem_limit_bytes=budget,
        ),
    )(x_p, w1_p, b1_p, w2_p, b2_p)

    return out_p[:B, :Out]


if __name__ == "__main__":
    # Small shapes consistent with the module's forward: x is (batch, input_size).
    batch, input_size, hidden_size, output_size = 8, 32, 64, 16

    key = jax.random.PRNGKey(0)
    kx, kw1, kb1, kw2, kb2 = jax.random.split(key, 5)

    x = jax.random.normal(kx, (batch, input_size), dtype=jnp.float32)

    # Parameter init mimicking nn.Linear's uniform(-1/sqrt(fan_in), 1/sqrt(fan_in)).
    bound1 = 1.0 / jnp.sqrt(jnp.float32(input_size))
    w1 = jax.random.uniform(kw1, (input_size, hidden_size),
                            minval=-bound1, maxval=bound1, dtype=jnp.float32)
    b1 = jax.random.uniform(kb1, (hidden_size,),
                            minval=-bound1, maxval=bound1, dtype=jnp.float32)

    bound2 = 1.0 / jnp.sqrt(jnp.float32(hidden_size))
    w2 = jax.random.uniform(kw2, (hidden_size, output_size),
                            minval=-bound2, maxval=bound2, dtype=jnp.float32)
    b2 = jax.random.uniform(kb2, (output_size,),
                            minval=-bound2, maxval=bound2, dtype=jnp.float32)

    # Pad / cast the weights ONCE (hoisted out of the per-call path).
    params = prepare_params(w1, b1, w2, b2)

    out = simple_mlp_forward(x, params)
    out = jax.block_until_ready(out)

    # Reference in plain JAX (f32); tolerance covers bf16 matmul inputs.
    ref = jnp.maximum(x @ w1 + b1, 0.0) @ w2 + b2
    assert out.shape == (batch, output_size)
    assert jnp.allclose(out, ref, atol=3e-2, rtol=3e-2)

    print("KERNEL_OK")
</pallas_src>

<mosaic_0001>
module attributes {stable_mosaic.version = 11 : i64} {
  func.func @_mlp_kernel_single_k(%arg0: i32, %arg1: memref<16x128xbf16, #tpu.memory_space<vmem>>, %arg2: memref<128x128xbf16, #tpu.memory_space<vmem>>, %arg3: memref<1x128xf32, #tpu.memory_space<vmem>>, %arg4: memref<128x128xbf16, #tpu.memory_space<vmem>>, %arg5: memref<1x128xf32, #tpu.memory_space<vmem>>, %arg6: memref<16x128xf32, #tpu.memory_space<vmem>>) attributes {dimension_semantics = [#tpu.dimension_semantics<parallel>], iteration_bounds = array<i64: 1>, scalar_prefetch = 0 : i64, scratch_operands = 0 : i64, tpu.core_type = #tpu.core_type<tc>, window_params = [{transform_indices = @transform_0, window_bounds = array<i64: 16, 128>}, {pipeline_mode = #tpu.pipeline_mode<synchronous>, transform_indices = @transform_1, window_bounds = array<i64: 128, 128>}, {pipeline_mode = #tpu.pipeline_mode<synchronous>, transform_indices = @transform_2, window_bounds = array<i64: 1, 128>}, {pipeline_mode = #tpu.pipeline_mode<synchronous>, transform_indices = @transform_3, window_bounds = array<i64: 128, 128>}, {pipeline_mode = #tpu.pipeline_mode<synchronous>, transform_indices = @transform_4, window_bounds = array<i64: 1, 128>}, {transform_indices = @transform_5, window_bounds = array<i64: 16, 128>}]} {
    %c0 = arith.constant 0 : index
    %c0_0 = arith.constant 0 : index
    %0 = vector.load %arg1[%c0, %c0_0] : memref<16x128xbf16, #tpu.memory_space<vmem>>, vector<16x128xbf16>
    %c0_1 = arith.constant 0 : index
    %c0_2 = arith.constant 0 : index
    %1 = vector.load %arg2[%c0_1, %c0_2] : memref<128x128xbf16, #tpu.memory_space<vmem>>, vector<128x128xbf16>
    %cst = arith.constant dense<0.000000e+00> : vector<16x128xf32>
    %2 = tpu.matmul %0, %1, %cst {dimension_numbers = #tpu.dot_dimension_numbers<[1], [0], [0], [1], [0, 0, 1, 1], [], []>} : vector<16x128xbf16>, vector<128x128xbf16>, vector<16x128xf32> -> vector<16x128xf32>
    %c0_3 = arith.constant 0 : index
    %c0_4 = arith.constant 0 : index
    %3 = vector.load %arg3[%c0_3, %c0_4] : memref<1x128xf32, #tpu.memory_space<vmem>>, vector<1x128xf32>
    %4 = vector.broadcast %3 : vector<1x128xf32> to vector<16x128xf32>
    %5 = arith.addf %2, %4 : vector<16x128xf32>
    %cst_5 = arith.constant 0.000000e+00 : f32
    %6 = vector.broadcast %cst_5 : f32 to vector<16x128xf32>
    %7 = arith.maximumf %5, %6 : vector<16x128xf32>
    %8 = arith.truncf %7 : vector<16x128xf32> to vector<16x128xbf16>
    %c0_6 = arith.constant 0 : index
    %c0_7 = arith.constant 0 : index
    %9 = vector.load %arg4[%c0_6, %c0_7] : memref<128x128xbf16, #tpu.memory_space<vmem>>, vector<128x128xbf16>
    %cst_8 = arith.constant dense<0.000000e+00> : vector<16x128xf32>
    %10 = tpu.matmul %8, %9, %cst_8 {dimension_numbers = #tpu.dot_dimension_numbers<[1], [0], [0], [1], [0, 0, 1, 1], [], []>} : vector<16x128xbf16>, vector<128x128xbf16>, vector<16x128xf32> -> vector<16x128xf32>
    %c0_9 = arith.constant 0 : index
    %c0_10 = arith.constant 0 : index
    %11 = vector.load %arg5[%c0_9, %c0_10] : memref<1x128xf32, #tpu.memory_space<vmem>>, vector<1x128xf32>
    %12 = vector.broadcast %11 : vector<1x128xf32> to vector<16x128xf32>
    %13 = arith.addf %10, %12 : vector<16x128xf32>
    %c0_11 = arith.constant 0 : index
    %c0_12 = arith.constant 0 : index
    %14 = vector.load %arg6[%c0_11, %c0_12] : memref<16x128xf32, #tpu.memory_space<vmem>>, vector<16x128xf32>
    tpu.vector_store %arg6[%c0_11, %c0_12], %13 {strides = array<i32>} : memref<16x128xf32, #tpu.memory_space<vmem>>, vector<16x128xf32>,
    return
  }
  func.func @transform_0(%arg0: i32) -> (i32, i32) {
    %c0_i32 = arith.constant 0 : i32
    %c0_i32_0 = arith.constant 0 : i32
    return %arg0, %c0_i32 : i32, i32
  }
  func.func @transform_1(%arg0: i32) -> (i32, i32) {
    %c0_i32 = arith.constant 0 : i32
    %c0_i32_0 = arith.constant 0 : i32
    %c0_i32_1 = arith.constant 0 : i32
    return %c0_i32, %c0_i32_0 : i32, i32
  }
  func.func @transform_2(%arg0: i32) -> (i32, i32) {
    %c0_i32 = arith.constant 0 : i32
    %c0_i32_0 = arith.constant 0 : i32
    %c0_i32_1 = arith.constant 0 : i32
    return %c0_i32, %c0_i32_0 : i32, i32
  }
  func.func @transform_3(%arg0: i32) -> (i32, i32) {
    %c0_i32 = arith.constant 0 : i32
    %c0_i32_0 = arith.constant 0 : i32
    %c0_i32_1 = arith.constant 0 : i32
    return %c0_i32, %c0_i32_0 : i32, i32
  }
  func.func @transform_4(%arg0: i32) -> (i32, i32) {
    %c0_i32 = arith.constant 0 : i32
    %c0_i32_0 = arith.constant 0 : i32
    %c0_i32_1 = arith.constant 0 : i32
    return %c0_i32, %c0_i32_0 : i32, i32
  }
  func.func @transform_5(%arg0: i32) -> (i32, i32) {
    %c0_i32 = arith.constant 0 : i32
    %c0_i32_0 = arith.constant 0 : i32
    return %arg0, %c0_i32 : i32, i32
  }
}

</mosaic_0001>

<bundles_post_ra>
// kernel: tpu_custom_call.1
= control target key start
LH: loop header
LB: loop body
LE: loop exit
PB: predicated region body
PF: predicated region fallthrough
CT: control target
= control target key end

     0   :  { %10 = vsyncpa [#allocation3], 0  ;;  %s518_s0 = inlined_call_operand.hbm [shape: bf16[16,128], index: 0, kind: input, shape index: {}]   ;;  %s519_s1 = inlined_call_operand.hbm [shape: bf16[128,128], index: 1, kind: input, shape index: {}]   ;;  %s520_s2 = inlined_call_operand.vmem [shape: f32[1,128], index: 2, kind: input, shape index: {}]   ;;  %s521_s3 = inlined_call_operand.hbm [shape: bf16[128,128], index: 3, kind: input, shape index: {}]   ;;  %s522_s4 = inlined_call_operand.vmem [shape: f32[1,128], index: 4, kind: input, shape index: {}]   ;;  %s523_s5 = inlined_call_operand.hbm [shape: f32[16,128], index: 5, kind: output, shape index: {}]  }
   0x1   :  { %11 = vsyncpa [#allocation6], 0 }
   0x2   :  { %12 = vsyncpa [#allocation4], 0  ;;  %s30_s20 = sshll.u32 %s519_s1, 4  ;;  %s462_s21 = smov [#allocation5]   ;;  %s31_s20 = int_to_ptr.hbm [resolvable:$true] %s30_s20 }
   0x3   :  { %s32_s22 = sshll.u32 %s462_s21, 4  ;;  %s17_s25 = sshll.u32 %s518_s0, 4  ;;  %s33_s22 = int_to_ptr.vmem [resolvable:$true] %s32_s22  ;;  %s18_s25 = int_to_ptr.hbm [resolvable:$true] %s17_s25 }
   0x4   :  { %s463_s26 = smov 64   ;;  %s464_s27 = smov 4  }
   0x5   :  { %38 = dma.hbm_to_vmem [thread:$0]  %s31_s20, 1024, %s33_s22, [#allocation6], %s463_s26, %s463_s26, %s464_s27  }
   0x6   :  { %s465_s28 = smov [#allocation2]   ;;  %s45_s7 = sshll.u32 %s521_s3, 4  ;;  %s46_s7 = int_to_ptr.hbm [resolvable:$true] %s45_s7 }
   0x7   :  { %s19_s29 = sshll.u32 %s465_s28, 4  ;;  %s466_s1 = smov [#allocation7]   ;;  %s20_s29 = int_to_ptr.vmem [resolvable:$true] %s19_s29 }
   0x8   :  { %25 = dma.hbm_to_vmem [thread:$0]  %s18_s25, 128, %s20_s29, [#allocation3], %s463_s26, %s463_s26, %s464_s27  }
   0x9   :  { %s47_s8 = sshll.u32 %s466_s1, 4  ;;  %s48_s8 = int_to_ptr.vmem [resolvable:$true] %s47_s8 }
   0xa   :  { %53 = dma.hbm_to_vmem [thread:$0]  %s46_s7, 1024, %s48_s8, [#allocation6], %s463_s26, %s463_s26, %s464_s27  }
   0xb   :  { %456 = dma.done.wait [#allocation3], 128  }
   0xc   :  { %457 = vsyncadd [#allocation3], 4294967168 }
   0xd   :  { %458 = dma.done.wait [#allocation6], 2048  }
   0xe   :  { %459 = vsyncadd [#allocation6], 4294965248  ;;  %v341_v0 = vld [vmem:[#allocation5 + $0x38] sm:$0xff]  ;;  %v340_v1 = vld [vmem:[#allocation5 + $0x30] sm:$0xff]  ;;  %s467_s11 = smov [#allocation8]   ;;  %s468_s15 = smov 128  }
   0xf   :  { %144 = vmatpush.bf16.msra.mxu0 %v341_v0  ;;  %v349_v2 = vld [vmem:[#allocation7 + $0x38] sm:$0xff]  ;;  %v348_v3 = vld [vmem:[#allocation7 + $0x30] sm:$0xff]  ;;  %v339_v4 = vld [vmem:[#allocation5 + $0x28] sm:$0xff]  ;;  %s249_s12 = sshll.u32 %s467_s11, 4  ;;  %s469_s16 = smov 8   ;;  %s250_s12 = int_to_ptr.vmem [resolvable:$true] %s249_s12 }
  0x10   :  { %229 = vmatpush.bf16.msra.mxu1 %v349_v2  ;;  %v347_v5 = vld [vmem:[#allocation7 + $0x28] sm:$0xff]  ;;  %v338_v6 = vld [vmem:[#allocation5 + $0x20] sm:$0xff]  ;;  %v337_v8 = vld [vmem:[#allocation5 + $0x18] sm:$0xff] }
  0x11   :  { %v346_v7 = vld [vmem:[#allocation7 + $0x20] sm:$0xff]  ;;  %v336_v9 = vld [vmem:[#allocation5 + $0x10] sm:$0xff]  ;;  %v335_v10 = vld [vmem:[#allocation5 + $0x8] sm:$0xff] }
  0x12   :  { %v334_v11 = vld [vmem:[#allocation5] sm:$0xff]  ;;  %v333_v12 = vld [vmem:[#allocation2] sm:$0xff]  ;;  %v344_v14 = vld [vmem:[#allocation7 + $0x10] sm:$0xff] }
  0x13   :  { %145 = vmatpush.bf16.msra.mxu0 %v340_v1  ;;  %v345_v13 = vld [vmem:[#allocation7 + $0x18] sm:$0xff]  ;;  %v343_v15 = vld [vmem:[#allocation7 + $0x8] sm:$0xff]  ;;  %v342_v16 = vld [vmem:[#allocation7] sm:$0xff] }
  0x14   :  { %230 = vmatpush.bf16.msra.mxu1 %v348_v3  ;;  %v358_v18 = vld [vmem:[%s520_s2] ss:$0 sm:$0xff]  ;;  %s251_s2 = sshll.u32 %s523_s5, 4  ;;  %s252_s2 = int_to_ptr.hbm [resolvable:$true] %s251_s2 }
  0x15   :  { %v359_v25 = vld [vmem:[%s522_s4] ss:$0 sm:$0xff] }
  0x17   :  { %146 = vmatpush.bf16.msra.mxu0 %v339_v4 }
  0x18   :  { %231 = vmatpush.bf16.msra.mxu1 %v347_v5 }
  0x1b   :  { %147 = vmatpush.bf16.msra.mxu0 %v338_v6 }
  0x1c   :  { %232 = vmatpush.bf16.msra.mxu1 %v346_v7 }
  0x1f   :  { %148 = vmatpush.bf16.msra.mxu0 %v337_v8 }
  0x20   :  { %233 = vmatpush.bf16.msra.mxu1 %v345_v13 }
  0x23   :  { %149 = vmatpush.bf16.msra.mxu0 %v336_v9 }
  0x24   :  { %234 = vmatpush.bf16.msra.mxu1 %v344_v14 }
  0x27   :  { %150 = vmatpush.bf16.msra.mxu0 %v335_v10 }
  0x28   :  { %235 = vmatpush.bf16.msra.mxu1 %v343_v15 }
  0x2b   :  { %151 = vmatpush.bf16.msra.mxu0 %v334_v11 }
  0x2c   :  { %236 = vmatpush.bf16.msra.mxu1 %v342_v16 }
  0x2e   :  { %152 = vmatmul.bf16.vlgmr.msra.gmra.mxu0 %v333_v12 }
  0xab   :  { %v153_v17 = vpop.f32.mrf.mxu0 }
  0xac   :  { %v154_v19 = vadd.f32 %v358_v18, %v153_v17 }
  0xae   :  { %v158_v22 = vmax.f32 %v154_v19, 0.0 }
  0xb3   :  { %v155_v20 = vpop.f32.mrf.mxu0 }
  0xb4   :  { %v156_v21 = vadd.f32 %v358_v18, %v155_v20 }
  0xb6   :  { %v159_v23 = vmax.f32 %v156_v21, 0.0 }
  0xb8   :  { %v160_v24 = vpack.c.bf16 %v159_v23, %v158_v22 }
  0xba   :  { %237 = vmatmul.bf16.vlgmr.msra.gmra.mxu1 %v160_v24 }
 0x137   :  { %v238_v26 = vpop.f32.mrf.mxu1 }
 0x138   :  { %v239_v27 = vadd.f32 %v359_v25, %v238_v26 }
 0x13a   :  { %243 = vst [vmem:[#allocation8] sm:$0xff] %v239_v27 }
 0x13f   :  { %v240_v28 = vpop.f32.mrf.mxu1 }
 0x140   :  { %v241_v29 = vadd.f32 %v359_v25, %v240_v28 }
 0x142   :  { %244 = vst [vmem:[#allocation8 + $0x8] sm:$0xff] %v241_v29 }
 0x143   :  { %257 = dma.vmem_to_hbm [thread:$0]  %s250_s12, 256, %s252_s2, [#allocation4], %s468_s15, %s468_s15, %s469_s16  }
 0x144   :  { %460 = dma.done.wait [#allocation4], 256  }
 0x145   :  { %461 = vsyncadd [#allocation4], 4294967040 }
 0x146   :  { %262 = vsyncpa [#allocation3], 1 }
 0x147   :  { %263 = vsyncpa [#allocation6], 1 }
 0x148   :  { %264 = vsyncpa [#allocation4], 1 }

</bundles_post_ra>
